<compile_context>
chip_gen: v7x
topology: tpu7x:2x2x1
jax: 0.10.0
libtpu: 0.0.40
codegen_flags: <defaults>
</compile_context>

<pallas_src>
import functools

import jax
import jax.numpy as jnp
import numpy as np
from jax import lax
from jax.experimental import pallas as pl
from jax.experimental.pallas import tpu as pltpu

_COLS = 128          # lane width
_SUB_ROWS = 2048     # inner sub-slab height (1 MiB of f32) -> bounded VMEM temps


def _round_up(x: int, m: int) -> int:
    return ((x + m - 1) // m) * m


def _rosenbrock_kernel(theta_ref, d0_ref, d1_ref, *, rows, cols, sub_rows):
    """One chunk: emit lane-dense partial sums of d0 and d1 for this chunk."""
    nsub = rows // sub_rows

    # Loop-invariant lane masks, hoisted (JAX does not CSE broadcasts in loops).
    last_lane = lax.broadcasted_iota(jnp.int32, (1, cols), 1) == cols - 1
    lane0 = lax.broadcasted_iota(jnp.int32, (1, cols), 1) == 0
    row0 = lax.broadcasted_iota(jnp.int32, (8, cols), 0) == 0

    def body(j, carry):
        acc0, acc1, s0, prev_last = carry
        off = pl.multiple_of(j * sub_rows, sub_rows)
        t = theta_ref[pl.ds(off, sub_rows), :]                 # (sub_rows, cols)

        # "next element" in flattened row-major order:
        #   lane roll covers columns 0..cols-2; the sublane+lane roll supplies
        #   column cols-1 (selected with a single broadcast lane mask).
        lane_next = pltpu.roll(t, shift=cols - 1, axis=1)      # t[r, (c+1)%C]
        wrap_next = pltpu.roll(lane_next, shift=sub_rows - 1, axis=0)
        nxt = jnp.where(last_lane, wrap_next, lane_next)

        d = nxt - t
        acc0 = acc0 + jnp.sum(d * d, axis=0, keepdims=True)    # (1, cols)
        om = 1.0 - t                                           # pad==1.0 -> 0
        acc1 = acc1 + jnp.sum(om * om, axis=0, keepdims=True)  # (1, cols)

        # Scalar fixups (all (1,1)):
        #   position (sub_rows-1, cols-1) above paired with this sub-slab's own
        #   first element (bogus wrap) -> subtract it; the true pair with the
        #   previous sub-slab's last element is added instead.  For j==0
        #   prev_last == t[0,0] so the added term is exactly 0 (the real
        #   cross-chunk pair is handled in the wrapper).
        first = t[0:1, 0:1]
        last = t[sub_rows - 1:sub_rows, cols - 1:cols]
        db = first - prev_last
        dw = first - last
        s0 = s0 + db * db - dw * dw
        return acc0, acc1, s0, last

    zrow = jnp.zeros((1, cols), jnp.float32)
    init = (zrow, zrow, jnp.zeros((1, 1), jnp.float32), theta_ref[0:1, 0:1])
    acc0, acc1, s0, _ = lax.fori_loop(0, nsub, body, init)

    # Fold the scalar correction into lane 0 and write an aligned (8,128)
    # output block (row 0 = partials, rows 1..7 = 0).
    p0row = acc0 + jnp.where(lane0, s0, 0.0)                   # (1, cols)
    d0_ref[...] = jnp.where(row0, p0row, 0.0)                  # (8, cols)
    d1_ref[...] = jnp.where(row0, acc1, 0.0)                   # (8, cols)


def rosenbrock(theta: jax.Array, *, max_rows_per_chunk: int = 16384) -> jax.Array:
    """theta: (N,) -> scalar f32 Rosenbrock value (100*d0 + d1)."""
    assert theta.ndim == 1 and theta.shape[0] > 1
    assert max_rows_per_chunk % 8 == 0
    if max_rows_per_chunk > _SUB_ROWS:
        assert max_rows_per_chunk % _SUB_ROWS == 0
    n = theta.shape[0]
    theta = theta.astype(jnp.float32)

    cols = _COLS
    rows_needed = pl.cdiv(n, cols)
    # Balanced chunk sizes (avoid an almost-all-padding last chunk).
    num_chunks = pl.cdiv(rows_needed, max_rows_per_chunk)
    rows_per_chunk = _round_up(pl.cdiv(rows_needed, num_chunks), 8)
    if rows_per_chunk > _SUB_ROWS:
        rows_per_chunk = _round_up(rows_per_chunk, _SUB_ROWS)
        sub_rows = _SUB_ROWS
    else:
        sub_rows = rows_per_chunk
    num_chunks = pl.cdiv(rows_needed, rows_per_chunk)
    total = num_chunks * rows_per_chunk * cols
    chunk_elems = rows_per_chunk * cols

    # Lane/sublane-dense view.  Pad value MUST be 1.0 (the kernel's d1 sum has
    # no padding mask and relies on (1 - 1.0)^2 == 0; the single real->pad d0
    # term is subtracted below).  Aligned sizes skip the pad copy entirely.
    if total == n:
        theta_2d = theta.reshape(num_chunks * rows_per_chunk, cols)
    else:
        theta_2d = jnp.pad(theta, (0, total - n),
                           constant_values=1.0).reshape(-1, cols)

    block_bytes = rows_per_chunk * cols * 4
    vmem_limit = min(64 * 1024 * 1024, 2 * block_bytes + 16 * 1024 * 1024)

    kernel = functools.partial(_rosenbrock_kernel, rows=rows_per_chunk,
                               cols=cols, sub_rows=sub_rows)
    p0, p1 = pl.pallas_call(
        kernel,
        out_shape=(jax.ShapeDtypeStruct((num_chunks * 8, cols), jnp.float32),
                   jax.ShapeDtypeStruct((num_chunks * 8, cols), jnp.float32)),
        grid_spec=pltpu.PrefetchScalarGridSpec(
            num_scalar_prefetch=0,
            grid=(num_chunks,),
            in_specs=[pl.BlockSpec((rows_per_chunk, cols), lambda i: (i, 0))],
            out_specs=[pl.BlockSpec((8, cols), lambda i: (i, 0)),
                       pl.BlockSpec((8, cols), lambda i: (i, 0))],
        ),
        compiler_params=pltpu.CompilerParams(
            dimension_semantics=("parallel",),
            vmem_limit_bytes=vmem_limit),
    )(theta_2d)

    d0 = jnp.sum(p0)
    d1 = jnp.sum(p1)
    # Cross-chunk boundary pairs (tiny, O(num_chunks)); all indices are real.
    if num_chunks > 1:
        b = jnp.arange(1, num_chunks, dtype=jnp.int32) * chunk_elems
        bd = theta[b] - theta[b - 1]
        d0 = d0 + jnp.sum(bd * bd)
    # Remove the single real->pad boundary term introduced by the 1.0 padding.
    if total != n:
        d0 = d0 - (1.0 - theta[n - 1]) ** 2
    return 100.0 * d0 + d1


def rosenbrock_ref(theta: jax.Array) -> jax.Array:
    theta = theta.astype(jnp.float32)
    tmp0 = theta[1:] - theta[:-1]
    tmp1 = 1.0 - theta
    return 100.0 * jnp.dot(tmp0, tmp0) + jnp.dot(tmp1, tmp1)


if __name__ == "__main__":
    key = jax.random.PRNGKey(0)
    k1, k2, k3 = jax.random.split(key, 3)

    # Module default: num_parameter = 3 (theta ~ N(0,1)); single-chunk path.
    theta_small = jax.random.normal(k1, (3,), dtype=jnp.float32)
    got = jax.block_until_ready(rosenbrock(theta_small))
    want = jax.block_until_ready(rosenbrock_ref(theta_small))
    assert np.allclose(np.asarray(got), np.asarray(want),
                       rtol=1e-5, atol=1e-5), (got, want)

    # Multi-chunk parallel-partials path: padding + boundary + tail fixups.
    theta_big = jax.random.normal(k2, (2000,), dtype=jnp.float32)
    got_b = jax.block_until_ready(rosenbrock(theta_big, max_rows_per_chunk=8))
    want_b = jax.block_until_ready(rosenbrock_ref(theta_big))
    assert np.allclose(np.asarray(got_b), np.asarray(want_b),
                       rtol=1e-4, atol=1e-4), (got_b, want_b)

    # Chunk-aligned fast path (no pad copy), boundary term only.
    theta_al = jax.random.normal(k3, (2048,), dtype=jnp.float32)
    got_a = jax.block_until_ready(rosenbrock(theta_al, max_rows_per_chunk=8))
    want_a = jax.block_until_ready(rosenbrock_ref(theta_al))
    assert np.allclose(np.asarray(got_a), np.asarray(want_a),
                       rtol=1e-4, atol=1e-4), (got_a, want_a)

    print("KERNEL_OK")
</pallas_src>

<mosaic_0001>
module attributes {stable_mosaic.version = 11 : i64} {
  func.func @_rosenbrock_kernel(%arg0: i32, %arg1: memref<8x128xf32, #tpu.memory_space<vmem>>, %arg2: memref<8x128xf32, #tpu.memory_space<vmem>>, %arg3: memref<8x128xf32, #tpu.memory_space<vmem>>) attributes {dimension_semantics = [#tpu.dimension_semantics<parallel>], iteration_bounds = array<i64: 1>, scalar_prefetch = 0 : i64, scratch_operands = 0 : i64, tpu.core_type = #tpu.core_type<tc>, window_params = [{transform_indices = @transform_0, window_bounds = array<i64: 8, 128>}, {transform_indices = @transform_1, window_bounds = array<i64: 8, 128>}, {transform_indices = @transform_2, window_bounds = array<i64: 8, 128>}]} {
    %0 = tpu.iota {dimensions = array<i32: 1>} : vector<1x128xi32>
    %c127_i32 = arith.constant 127 : i32
    %1 = vector.broadcast %c127_i32 : i32 to vector<1x128xi32>
    %2 = arith.cmpi eq, %0, %1 : vector<1x128xi32>
    %3 = tpu.iota {dimensions = array<i32: 1>} : vector<1x128xi32>
    %c0_i32 = arith.constant 0 : i32
    %4 = vector.broadcast %c0_i32 : i32 to vector<1x128xi32>
    %5 = arith.cmpi eq, %3, %4 : vector<1x128xi32>
    %6 = tpu.iota {dimensions = array<i32: 0>} : vector<8x128xi32>
    %c0_i32_0 = arith.constant 0 : i32
    %7 = vector.broadcast %c0_i32_0 : i32 to vector<8x128xi32>
    %8 = arith.cmpi eq, %6, %7 : vector<8x128xi32>
    %cst = arith.constant 0.000000e+00 : f32
    %9 = vector.broadcast %cst : f32 to vector<1x128xf32>
    %cst_1 = arith.constant 0.000000e+00 : f32
    %10 = vector.broadcast %cst_1 : f32 to vector<1x1xf32>
    %c0 = arith.constant 0 : index
    %c0_2 = arith.constant 0 : index
    %11 = vector.load %arg1[%c0, %c0_2] : memref<8x128xf32, #tpu.memory_space<vmem>>, vector<1x1xf32>
    %c0_i32_3 = arith.constant 0 : i32
    %c8_i32 = arith.constant 8 : i32
    %12 = arith.muli %c0_i32_3, %c8_i32 : i32
    %13 = tpu.assume_multiple %12, 8 : i32
    %14 = arith.index_cast %13 : i32 to index
    %c0_4 = arith.constant 0 : index
    %15 = vector.load %arg1[%14, %c0_4] : memref<8x128xf32, #tpu.memory_space<vmem>>, vector<8x128xf32>
    %c127_i32_5 = arith.constant 127 : i32
    %16 = tpu.dynamic_rotate %15 by %c127_i32_5 dim 1 : vector<8x128xf32>, i32 -> vector<8x128xf32>
    %c7_i32 = arith.constant 7 : i32
    %17 = tpu.dynamic_rotate %16 by %c7_i32 dim 0 : vector<8x128xf32>, i32 -> vector<8x128xf32>
    %18 = vector.shape_cast %2 : vector<1x128xi1> to vector<1x128xi1>
    %19 = vector.broadcast %18 : vector<1x128xi1> to vector<8x128xi1>
    %20 = arith.select %19, %17, %16 : vector<8x128xi1>, vector<8x128xf32>
    %21 = arith.subf %20, %15 : vector<8x128xf32>
    %22 = arith.mulf %21, %21 : vector<8x128xf32>
    %cst_6 = arith.constant dense<0.000000e+00> : vector<128xf32>
    %23 = vector.multi_reduction <add>, %22, %cst_6 [0] : vector<8x128xf32> to vector<128xf32>
    %24 = vector.shape_cast %23 : vector<128xf32> to vector<1x128xf32>
    %25 = arith.addf %9, %24 : vector<1x128xf32>
    %cst_7 = arith.constant 1.000000e+00 : f32
    %26 = vector.broadcast %cst_7 : f32 to vector<8x128xf32>
    %27 = arith.subf %26, %15 : vector<8x128xf32>
    %28 = arith.mulf %27, %27 : vector<8x128xf32>
    %cst_8 = arith.constant dense<0.000000e+00> : vector<128xf32>
    %29 = vector.multi_reduction <add>, %28, %cst_8 [0] : vector<8x128xf32> to vector<128xf32>
    %30 = vector.shape_cast %29 : vector<128xf32> to vector<1x128xf32>
    %31 = arith.addf %9, %30 : vector<1x128xf32>
    %32 = vector.extract_strided_slice %15 {offsets = [0, 0], sizes = [1, 1], strides = [1, 1]} : vector<8x128xf32> to vector<1x1xf32>
    %33 = vector.extract_strided_slice %15 {offsets = [7, 127], sizes = [1, 1], strides = [1, 1]} : vector<8x128xf32> to vector<1x1xf32>
    %34 = arith.subf %32, %11 : vector<1x1xf32>
    %35 = arith.subf %32, %33 : vector<1x1xf32>
    %36 = arith.mulf %34, %34 : vector<1x1xf32>
    %37 = arith.addf %10, %36 : vector<1x1xf32>
    %38 = arith.mulf %35, %35 : vector<1x1xf32>
    %39 = arith.subf %37, %38 : vector<1x1xf32>
    %c1_i32 = arith.constant 1 : i32
    %cst_9 = arith.constant 0.000000e+00 : f32
    %40 = vector.shape_cast %39 : vector<1x1xf32> to vector<1x1xf32>
    %41 = vector.broadcast %40 : vector<1x1xf32> to vector<1x128xf32>
    %42 = vector.broadcast %cst_9 : f32 to vector<1x128xf32>
    %43 = arith.select %5, %41, %42 : vector<1x128xi1>, vector<1x128xf32>
    %44 = arith.addf %25, %43 : vector<1x128xf32>
    %cst_10 = arith.constant 0.000000e+00 : f32
    %45 = vector.shape_cast %44 : vector<1x128xf32> to vector<1x128xf32>
    %46 = vector.broadcast %45 : vector<1x128xf32> to vector<8x128xf32>
    %47 = vector.broadcast %cst_10 : f32 to vector<8x128xf32>
    %48 = arith.select %8, %46, %47 : vector<8x128xi1>, vector<8x128xf32>
    %c0_11 = arith.constant 0 : index
    %c0_12 = arith.constant 0 : index
    %49 = vector.load %arg2[%c0_11, %c0_12] : memref<8x128xf32, #tpu.memory_space<vmem>>, vector<8x128xf32>
    tpu.vector_store %arg2[%c0_11, %c0_12], %48 {strides = array<i32>} : memref<8x128xf32, #tpu.memory_space<vmem>>, vector<8x128xf32>,
    %cst_13 = arith.constant 0.000000e+00 : f32
    %50 = vector.shape_cast %31 : vector<1x128xf32> to vector<1x128xf32>
    %51 = vector.broadcast %50 : vector<1x128xf32> to vector<8x128xf32>
    %52 = vector.broadcast %cst_13 : f32 to vector<8x128xf32>
    %53 = arith.select %8, %51, %52 : vector<8x128xi1>, vector<8x128xf32>
    %c0_14 = arith.constant 0 : index
    %c0_15 = arith.constant 0 : index
    %54 = vector.load %arg3[%c0_14, %c0_15] : memref<8x128xf32, #tpu.memory_space<vmem>>, vector<8x128xf32>
    tpu.vector_store %arg3[%c0_14, %c0_15], %53 {strides = array<i32>} : memref<8x128xf32, #tpu.memory_space<vmem>>, vector<8x128xf32>,
    return
  }
  func.func @transform_0(%arg0: i32) -> (i32, i32) {
    %c0_i32 = arith.constant 0 : i32
    %c0_i32_0 = arith.constant 0 : i32
    return %arg0, %c0_i32 : i32, i32
  }
  func.func @transform_1(%arg0: i32) -> (i32, i32) {
    %c0_i32 = arith.constant 0 : i32
    %c0_i32_0 = arith.constant 0 : i32
    return %arg0, %c0_i32 : i32, i32
  }
  func.func @transform_2(%arg0: i32) -> (i32, i32) {
    %c0_i32 = arith.constant 0 : i32
    %c0_i32_0 = arith.constant 0 : i32
    return %arg0, %c0_i32 : i32, i32
  }
}

</mosaic_0001>

<bundles_post_ra>
// kernel: tpu_custom_call.1
= control target key start
LH: loop header
LB: loop body
LE: loop exit
PB: predicated region body
PF: predicated region fallthrough
CT: control target
= control target key end

     0   :  { %8 = vsyncpa [#allocation3], 0  ;;  %s251_s0 = inlined_call_operand.hbm [shape: f32[8,128], index: 0, kind: input, shape index: {}]   ;;  %s252_s1 = inlined_call_operand.hbm [shape: f32[8,128], index: 1, kind: output, shape index: {0}]   ;;  %s253_s2 = inlined_call_operand.hbm [shape: f32[8,128], index: 2, kind: output, shape index: {1}]  }
   0x1   :  { %9 = vsyncpa [#allocation4], 0 }
   0x2   :  { %10 = vsyncpa [#allocation7], 0  ;;  %s192_s9 = smov [#allocation2]   ;;  %s120_s13 = scalar_lea.hbm %s251_s0, 128 }
   0x3   :  { %s17_s10 = sshll.u32 %s192_s9, 4  ;;  %p121_p0 = scmp.ne.s32.totalorder %s251_s0, %s120_s13  ;;  %s18_s10 = int_to_ptr.vmem [resolvable:$true] %s17_s10 }
   0x4   :  { %p124_p1 = scmp.lt.u32.totalorder %s120_s13, %s251_s0 }
   0x6   :  { %p126_p2 = pnand %p124_p1, %p121_p0 }
   0x8   :  { %129 = shalt.err (!%p126_p2)
}
   0x9   :  { %s130_s18 = scalar_lea.vmem %s18_s10, 128  ;;  %p135_p4 = scmp.lt.s32.totalorder %s18_s10, %s18_s10 }
   0xa   :  { %p131_p3 = scmp.ne.s32.totalorder %s18_s10, %s130_s18  ;;  %p136_p5 = scmp.lt.s32.totalorder %s130_s18, %s130_s18 }
   0xc   :  { %p137_p6 = por %p136_p5, %p135_p4 }
   0xe   :  { %p138_p7 = pnand %p137_p6, %p131_p3 }
  0x10   :  { %141 = shalt.err (!%p138_p7)
}
  0x11   :  { %20 = dma.hbm_to_vmem [thread:$0]  %s251_s0, 128, %s18_s10, [#allocation3]  }
  0x12   :  { %186 = dma.done.wait [#allocation3], 128  }
  0x13   :  { %187 = vsyncadd [#allocation3], 4294967168  ;;  %v193_v0 = vmov 0   ;;  %v32_v1 = vld [vmem:[#allocation2] sm:$0xff]  ;;  %s194_s21 = smov 1   ;;  %s195_s22 = smov 127   ;;  %v24_v15 = vlaneseq }
  0x14   :  { %118 = vset.pattern.permute.xlu1 %v193_v0  ;;  %119 = vset.pattern.permute.xlu0 %v193_v0  ;;  %v59_v2 = vrot.slane %v32_v1, 7  ;;  %v31_v3 = vld [vmem:[#allocation2] sm:$0x1]  ;;  %v48_v4 = vsub.f32 1.0, %v32_v1  ;;  %s196_s0 = smov [#allocation6]  }
  0x15   :  { %v57_v5 = vsub.f32 %v32_v1, %v31_v3  ;;  %v29_v17 = vshrl.u32 %v24_v15, 7  ;;  %s99_s23 = sshll.u32 %s196_s0, 4  ;;  %s100_s23 = int_to_ptr.vmem [resolvable:$true] %s99_s23 }
  0x16   :  { %60 = vrot.lane.b32.xlu0 %v59_v2, %s194_s21  ;;  %v49_v6 = vmul.f32 %v48_v4, %v48_v4  ;;  %s142_s24 = scalar_lea.vmem %s100_s23, 128  ;;  %p147_p9 = scmp.lt.s32.totalorder %s100_s23, %s100_s23 }
  0x17   :  { %v64_v10 = vmul.f32 %v57_v5, %v57_v5  ;;  %vm30_vm0 = vcmp.eq.s32.totalorder %v29_v17, 0  ;;  %p143_p8 = scmp.ne.s32.totalorder %s100_s23, %s142_s24  ;;  %p148_p10 = scmp.lt.s32.totalorder %s142_s24, %s142_s24 }
  0x18   :  { %v50_v8 = vrot.slane %v49_v6, 4 }
  0x19   :  { %p149_p11 = por %p148_p10, %p147_p9 }
  0x1a   :  { %33 = vrot.lane.b32.xlu0 %v32_v1, %s195_s22  ;;  %v51_v11 = vadd.f32 %v50_v8, %v49_v6 }
  0x1b   :  { %p150_p12 = pnand %p149_p11, %p143_p8 }
  0x1c   :  { %v52_v13 = vrot.slane %v51_v11, 2 }
  0x1e   :  { %v53_v16 = vadd.f32 %v52_v13, %v51_v11 }
  0x20   :  { %v54_v18 = vrot.slane %v53_v16, 1 }
  0x22   :  { %v55_v19 = vadd.f32 %v54_v18, %v53_v16 }
  0x24   :  { %v81_v20 = vsel %vm30_vm0, %v55_v19, 0.0 }
  0x25   :  { %82 = vst [vmem:[#allocation6] sm:$0xff] %v81_v20 }
  0x88   :  { %v61_v7 = vpop.permute.xlu0 %60 }
  0x89   :  { %v63_v9 = vsub.f32 %v32_v1, %v61_v7 }
  0x8b   :  { %v66_v12 = vmul.f32 %v63_v9, %v63_v9 }
  0x8d   :  { %v67_v14 = vsub.f32 %v64_v10, %v66_v12 }
  0x8f   :  { %70 = vperm.xlu1 %118, %v67_v14  }
  0x90   :  { %153 = shalt.err (!%p150_p12)
}
  0x91   :  { %s154_s27 = scalar_lea.hbm %s253_s2, 128 }
  0x92   :  { %p155_p13 = scmp.ne.s32.totalorder %s253_s2, %s154_s27  ;;  %p158_p0 = scmp.lt.u32.totalorder %s154_s27, %s253_s2 }
  0x94   :  { %p160_p1 = pnand %p158_p0, %p155_p13 }
  0x96   :  { %163 = shalt.err (!%p160_p1)
}
  0x97   :  { %102 = dma.vmem_to_hbm [thread:$0]  %s100_s23, 128, %s253_s2, [#allocation7]   ;;  %v25_v21 = vand.u32 127, %v24_v15  ;;  %v34_v22 = vpop.permute.xlu0 %33  ;;  %v77_v33 = vsub.s32 0, %v29_v17 }
  0x98   :  { %v35_v23 = vrot.slane %v34_v22, 1  ;;  %s197_s6 = smov [#allocation5]  }
  0x99   :  { %vm26_vm1 = vcmp.eq.s32.totalorder %v25_v21, 127  ;;  %vm27_vm2 = vcmp.eq.s32.totalorder %v25_v21, 0  ;;  %s89_s2 = sshll.u32 %s197_s6, 4  ;;  %s90_s2 = int_to_ptr.vmem [resolvable:$true] %s89_s2 }
  0x9a   :  { %v38_v24 = vsel %vm26_vm1, %v35_v23, %v34_v22  ;;  %s164_s7 = scalar_lea.vmem %s90_s2, 128  ;;  %p169_p3 = scmp.lt.s32.totalorder %s90_s2, %s90_s2 }
  0x9b   :  { %v39_v25 = vsub.f32 %v38_v24, %v32_v1  ;;  %p165_p2 = scmp.ne.s32.totalorder %s90_s2, %s164_s7  ;;  %p170_p4 = scmp.lt.s32.totalorder %s164_s7, %s164_s7 }
  0x9d   :  { %v40_v26 = vmul.f32 %v39_v25, %v39_v25  ;;  %p171_p5 = por %p170_p4, %p169_p3 }
  0x9f   :  { %v41_v27 = vrot.slane %v40_v26, 4  ;;  %p172_p6 = pnand %p171_p5, %p165_p2 }
  0xa1   :  { %v42_v28 = vadd.f32 %v41_v27, %v40_v26 }
  0xa3   :  { %v43_v29 = vrot.slane %v42_v28, 2 }
  0xa5   :  { %v44_v30 = vadd.f32 %v43_v29, %v42_v28 }
  0xa7   :  { %v45_v31 = vrot.slane %v44_v30, 1 }
  0xa9   :  { %v46_v32 = vadd.f32 %v45_v31, %v44_v30 }
 0x10e   :  { %v71_v34 = vpop.permute.xlu1 %70 }
 0x10f   :  { %v73_v35 = vsel %vm27_vm2, %v71_v34, 0.0 }
 0x110   :  { %v74_v36 = vadd.f32 %v73_v35, %v46_v32 }
 0x112   :  { %v78_v37 = vrot.slane %v74_v36, %v77_v33 }
 0x114   :  { %v79_v38 = vsel %vm30_vm0, %v78_v37, 0.0 }
 0x115   :  { %80 = vst [vmem:[#allocation5] sm:$0xff] %v79_v38 }
 0x116   :  { %175 = shalt.err (!%p172_p6)
}
 0x117   :  { %s176_s10 = scalar_lea.hbm %s252_s1, 128 }
 0x118   :  { %p177_p7 = scmp.ne.s32.totalorder %s252_s1, %s176_s10  ;;  %p180_p8 = scmp.lt.u32.totalorder %s176_s10, %s252_s1 }
 0x11a   :  { %p182_p9 = pnand %p180_p8, %p177_p7 }
 0x11c   :  { %185 = shalt.err (!%p182_p9)
}
 0x11d   :  { %92 = dma.vmem_to_hbm [thread:$0]  %s90_s2, 128, %s252_s1, [#allocation4]  }
 0x11e   :  { %188 = dma.done.wait [#allocation4], 128  }
 0x11f   :  { %189 = vsyncadd [#allocation4], 4294967168 }
 0x120   :  { %190 = dma.done.wait [#allocation7], 128  }
 0x121   :  { %191 = vsyncadd [#allocation7], 4294967168 }
 0x122   :  { %109 = vsyncpa [#allocation3], 1 }
 0x123   :  { %110 = vsyncpa [#allocation4], 1 }
 0x124   :  { %111 = vsyncpa [#allocation7], 1 }

</bundles_post_ra>
